<compile_context>
chip_gen: v5e
topology: v5e:2x2
jax: 0.10.0
libtpu: 0.0.40
codegen_flags: <defaults>
</compile_context>

<pallas_src>
import math

import jax
import jax.numpy as jnp
from jax.experimental import pallas as pl
from jax.experimental.pallas import tpu as pltpu


def _round_up(x: int, m: int) -> int:
    return ((x + m - 1) // m) * m


def _default_tm() -> int:
    # v5e: 128-wide MXU -> 128 rows is enough; v6e/v7x: 256-wide MXU -> 256 rows.
    try:
        kind = jax.devices()[0].device_kind.lower()
    except Exception:  # pragma: no cover - defensive
        return 256
    if "v5 lite" in kind or "v5e" in kind:
        return 128
    return 256


# ---------------------------------------------------------------------------
# Path A: block-diagonal fold -> one dense, lane-dense (M, G*I) @ (G*I, G*J).
# ---------------------------------------------------------------------------

def fold_block_diagonal(weight):
    """(G, I, J) -> block-diagonal (G*I, G*J).  Precompute once when possible."""
    G, I, J = weight.shape
    eye = jnp.eye(G, dtype=weight.dtype)
    # w_bd[g*I + i, h*J + j] = weight[g, i, j] if g == h else 0
    return jnp.einsum("gh,gij->gihj", eye, weight).reshape(G * I, G * J)


def _bd_kernel_bias(x_ref, w_ref, b_ref, o_ref):
    # x_ref: (tm, K), w_ref: (K, N), b_ref: (1, N) f32, o_ref: (tm, N)
    acc = jnp.dot(x_ref[...], w_ref[...], preferred_element_type=jnp.float32)
    o_ref[...] = (acc + b_ref[...]).astype(o_ref.dtype)


def _bd_kernel_nobias(x_ref, w_ref, o_ref):
    acc = jnp.dot(x_ref[...], w_ref[...], preferred_element_type=jnp.float32)
    o_ref[...] = acc.astype(o_ref.dtype)


# ---------------------------------------------------------------------------
# Path B: large per-group features -> per-group 2-D MXU matmuls, all groups per
# program, J tiled lane-dense.  Static Python loop over the (small, static)
# group count; each iteration is a plain 2-D dot so it lowers directly to the
# MXU without batched dot_general or in-kernel transposes.
# ---------------------------------------------------------------------------

def _grouped_kernel_bias(x_ref, w_ref, b_ref, o_ref):
    # x_ref: (tm, G, I), w_ref: (G, I, tj), b_ref: (G, 1, tj) f32, o_ref: (tm, G, tj)
    G = w_ref.shape[0]
    for g in range(G):
        acc = jnp.dot(x_ref[:, g, :], w_ref[g],
                      preferred_element_type=jnp.float32)
        o_ref[:, g, :] = (acc + b_ref[g]).astype(o_ref.dtype)


def _grouped_kernel_nobias(x_ref, w_ref, o_ref):
    G = w_ref.shape[0]
    for g in range(G):
        acc = jnp.dot(x_ref[:, g, :], w_ref[g],
                      preferred_element_type=jnp.float32)
        o_ref[:, g, :] = acc.astype(o_ref.dtype)


# ---------------------------------------------------------------------------
# Wrapper
# ---------------------------------------------------------------------------

def grouped_linear(x, weight, bias=None, *, folded_weight=None, tm=None,
                   fold_max_dim=1024):
    """GroupedLinear forward.

    x: (..., G, I); weight: (G, I, J); bias: (G, J) or None.
    folded_weight: optional precomputed fold_block_diagonal(weight).
    Returns (..., G, J) in x.dtype.
    """
    G, I, J = weight.shape
    assert x.shape[-2:] == (G, I), (x.shape, weight.shape)
    lead = x.shape[:-2]
    M = int(math.prod(lead)) if lead else 1
    K, N = G * I, G * J
    out_dtype = x.dtype
    itemsize = jnp.dtype(x.dtype).itemsize

    if tm is None:
        tm = _default_tm()
    # M tile: second-minor dim of blocks must be a multiple of 8; pad ragged M.
    tm_eff = _round_up(min(tm, _round_up(M, 8)), 8)
    # Keep the per-step x block modest (~4 MiB) so double-buffered inputs plus
    # the resident weight comfortably fit VMEM on all of v5e/v6e/v7x.
    while tm_eff > 8 and tm_eff * K * itemsize > (4 << 20):
        tm_eff = _round_up(tm_eff // 2, 8)
    m_pad = _round_up(M, tm_eff)

    bias_f32 = None if bias is None else bias.astype(jnp.float32)
    # Above the 32 MiB scoped default, but leaves headroom on v7x (64 MiB VMEM).
    vmem_limit = 48 * 1024 * 1024

    use_fold = (folded_weight is not None) or (K <= fold_max_dim and N <= fold_max_dim)

    if use_fold:
        # --- Path A: single dense matmul against the block-diagonal weight ---
        x2 = x.reshape(M, K)                      # free contiguous reshape
        if m_pad != M:
            x2 = jnp.pad(x2, ((0, m_pad - M), (0, 0)))
        w_bd = folded_weight if folded_weight is not None else fold_block_diagonal(weight)
        assert w_bd.shape == (K, N)

        in_specs = [
            pl.BlockSpec((tm_eff, K), lambda m: (m, 0)),
            pl.BlockSpec((K, N), lambda m: (0, 0)),      # resident across grid
        ]
        operands = [x2, w_bd]
        if bias_f32 is not None:
            in_specs.append(pl.BlockSpec((1, N), lambda m: (0, 0)))
            operands.append(bias_f32.reshape(1, N))
            kernel = _bd_kernel_bias
        else:
            kernel = _bd_kernel_nobias

        flops = 2 * m_pad * K * N
        bytes_accessed = (x2.size * x2.dtype.itemsize
                          + w_bd.size * w_bd.dtype.itemsize
                          + m_pad * N * jnp.dtype(out_dtype).itemsize
                          + (0 if bias_f32 is None else N * 4))

        out = pl.pallas_call(
            kernel,
            out_shape=jax.ShapeDtypeStruct((m_pad, N), out_dtype),
            grid_spec=pltpu.PrefetchScalarGridSpec(
                num_scalar_prefetch=0,
                grid=(m_pad // tm_eff,),
                in_specs=in_specs,
                out_specs=pl.BlockSpec((tm_eff, N), lambda m: (m, 0)),
            ),
            compiler_params=pltpu.CompilerParams(
                dimension_semantics=("parallel",),
                vmem_limit_bytes=vmem_limit,
            ),
            cost_estimate=pl.CostEstimate(
                flops=flops, transcendentals=0, bytes_accessed=bytes_accessed),
        )(*operands)

        return out[:M].reshape(*lead, G, J)

    # --- Path B: large per-group features; native (M, G, I) layout, J tiled ---
    x3 = x.reshape(M, G, I)
    if m_pad != M:
        x3 = jnp.pad(x3, ((0, m_pad - M), (0, 0), (0, 0)))

    if J % 128 == 0:
        tj = next(t for t in (512, 256, 128) if J % t == 0)
    else:
        tj = J  # full-dim block satisfies the lane tiling rule
    # TODO(synk): add an I (contraction) grid axis with an f32 accumulator
    # scratch for per-group weights too large for v7x's 64 MiB VMEM.

    in_specs = [
        pl.BlockSpec((tm_eff, G, I), lambda m, j: (m, 0, 0)),
        pl.BlockSpec((G, I, tj), lambda m, j: (0, 0, j)),
    ]
    operands = [x3, weight]
    if bias_f32 is not None:
        in_specs.append(pl.BlockSpec((G, 1, tj), lambda m, j: (0, 0, j)))
        operands.append(bias_f32.reshape(G, 1, J))
        kernel = _grouped_kernel_bias
    else:
        kernel = _grouped_kernel_nobias

    flops = 2 * m_pad * G * I * J
    bytes_accessed = (x3.size * x3.dtype.itemsize
                      + weight.size * weight.dtype.itemsize
                      + m_pad * G * J * jnp.dtype(out_dtype).itemsize
                      + (0 if bias_f32 is None else G * J * 4))

    out = pl.pallas_call(
        kernel,
        out_shape=jax.ShapeDtypeStruct((m_pad, G, J), out_dtype),
        grid_spec=pltpu.PrefetchScalarGridSpec(
            num_scalar_prefetch=0,
            grid=(m_pad // tm_eff, J // tj),
            in_specs=in_specs,
            out_specs=pl.BlockSpec((tm_eff, G, tj), lambda m, j: (m, 0, j)),
        ),
        compiler_params=pltpu.CompilerParams(
            dimension_semantics=("parallel", "parallel"),
            vmem_limit_bytes=vmem_limit,
        ),
        cost_estimate=pl.CostEstimate(
            flops=flops, transcendentals=0, bytes_accessed=bytes_accessed),
    )(*operands)

    return out[:M].reshape(*lead, G, J)


def init_grouped_linear_params(key, in_features, out_features, num_groups,
                               dtype=jnp.float32, bias=True):
    """Deterministic init mimicking the PyTorch module's reset_parameters."""
    G = num_groups
    I = in_features // G
    J = out_features // G
    kw, kb = jax.random.split(key)
    # kaiming_uniform_(a=sqrt(5)) on each (I, J) slice -> bound = 1/sqrt(fan_in)
    w_bound = 1.0 / math.sqrt(I)
    weight = jax.random.uniform(kw, (G, I, J), dtype=dtype,
                                minval=-w_bound, maxval=w_bound)
    if bias:
        b_bound = 1.0 / math.sqrt(I)
        b = jax.random.uniform(kb, (G, J), dtype=dtype,
                               minval=-b_bound, maxval=b_bound)
    else:
        b = None
    return weight, b


if __name__ == "__main__":
    key = jax.random.PRNGKey(0)
    k_x, k_p, k_r, k_x2, k_p2 = jax.random.split(key, 5)

    # ------------------------------------------------------------------
    # Path A: typical CrossViT config (small per-group features).
    # batch=2, seq=8, num_groups=4, in_features=32, out_features=32
    # ------------------------------------------------------------------
    B, S = 2, 8
    in_features, out_features, num_groups = 32, 32, 4
    G = num_groups
    I = in_features // G
    J = out_features // G

    x = jax.random.normal(k_x, (B, S, G, I), dtype=jnp.float32)
    weight, bias = init_grouped_linear_params(
        k_p, in_features, out_features, num_groups, dtype=jnp.float32, bias=True)

    # 1) With bias.
    out = jax.block_until_ready(grouped_linear(x, weight, bias))
    ref = jnp.einsum('...gi,gij->...gj', x, weight) + bias
    assert out.shape == (B, S, G, J), out.shape
    assert jnp.allclose(out, ref, atol=1e-5, rtol=1e-5), \
        float(jnp.max(jnp.abs(out - ref)))

    # 2) Without bias (bias-free kernel variant, no zero tensor DMA).
    out_nb = jax.block_until_ready(grouped_linear(x, weight, None))
    ref_nb = jnp.einsum('...gi,gij->...gj', x, weight)
    assert jnp.allclose(out_nb, ref_nb, atol=1e-5, rtol=1e-5), \
        float(jnp.max(jnp.abs(out_nb - ref_nb)))

    # 3) Ragged leading dims (M not a multiple of the tile) + precomputed fold.
    w_folded = fold_block_diagonal(weight)
    x_r = jax.random.normal(k_r, (3, 5, G, I), dtype=jnp.float32)
    out_r = jax.block_until_ready(
        grouped_linear(x_r, weight, bias, folded_weight=w_folded))
    ref_r = jnp.einsum('...gi,gij->...gj', x_r, weight) + bias
    assert out_r.shape == (3, 5, G, J), out_r.shape
    assert jnp.allclose(out_r, ref_r, atol=1e-5, rtol=1e-5), \
        float(jnp.max(jnp.abs(out_r - ref_r)))

    # ------------------------------------------------------------------
    # Path B: large per-group features (G*I above the fold threshold).
    # num_groups=8, in_features=2048 (I=256), out_features=1024 (J=128).
    # ------------------------------------------------------------------
    in2, out2, g2 = 2048, 1024, 8
    G2, I2, J2 = g2, in2 // g2, out2 // g2
    x_b = jax.random.normal(k_x2, (B, S, G2, I2), dtype=jnp.float32)
    w_b, b_b = init_grouped_linear_params(
        k_p2, in2, out2, g2, dtype=jnp.float32, bias=True)

    out_b = jax.block_until_ready(grouped_linear(x_b, w_b, b_b))
    ref_b = jnp.einsum('...gi,gij->...gj', x_b, w_b) + b_b
    assert out_b.shape == (B, S, G2, J2), out_b.shape
    assert jnp.allclose(out_b, ref_b, atol=1e-4, rtol=1e-4), \
        float(jnp.max(jnp.abs(out_b - ref_b)))

    print("KERNEL_OK")
</pallas_src>

<mosaic_0001>
module attributes {stable_mosaic.version = 11 : i64} {
  func.func @_bd_kernel_bias(%arg0: i32, %arg1: memref<16x32xf32, #tpu.memory_space<vmem>>, %arg2: memref<32x32xf32, #tpu.memory_space<vmem>>, %arg3: memref<1x32xf32, #tpu.memory_space<vmem>>, %arg4: memref<16x32xf32, #tpu.memory_space<vmem>>) attributes {dimension_semantics = [#tpu.dimension_semantics<parallel>], iteration_bounds = array<i64: 1>, scalar_prefetch = 0 : i64, scratch_operands = 0 : i64, tpu.core_type = #tpu.core_type<tc>, window_params = [{transform_indices = @transform_0, window_bounds = array<i64: 16, 32>}, {pipeline_mode = #tpu.pipeline_mode<synchronous>, transform_indices = @transform_1, window_bounds = array<i64: 32, 32>}, {pipeline_mode = #tpu.pipeline_mode<synchronous>, transform_indices = @transform_2, window_bounds = array<i64: 1, 32>}, {transform_indices = @transform_3, window_bounds = array<i64: 16, 32>}]} {
    %c0 = arith.constant 0 : index
    %c0_0 = arith.constant 0 : index
    %0 = vector.load %arg1[%c0, %c0_0] : memref<16x32xf32, #tpu.memory_space<vmem>>, vector<16x32xf32>
    %c0_1 = arith.constant 0 : index
    %c0_2 = arith.constant 0 : index
    %1 = vector.load %arg2[%c0_1, %c0_2] : memref<32x32xf32, #tpu.memory_space<vmem>>, vector<32x32xf32>
    %cst = arith.constant dense<0.000000e+00> : vector<16x32xf32>
    %2 = tpu.matmul %0, %1, %cst {dimension_numbers = #tpu.dot_dimension_numbers<[1], [0], [0], [1], [0, 0, 1, 1], [], []>} : vector<16x32xf32>, vector<32x32xf32>, vector<16x32xf32> -> vector<16x32xf32>
    %c0_3 = arith.constant 0 : index
    %c0_4 = arith.constant 0 : index
    %3 = vector.load %arg3[%c0_3, %c0_4] : memref<1x32xf32, #tpu.memory_space<vmem>>, vector<1x32xf32>
    %4 = vector.broadcast %3 : vector<1x32xf32> to vector<16x32xf32>
    %5 = arith.addf %2, %4 : vector<16x32xf32>
    %c0_5 = arith.constant 0 : index
    %c0_6 = arith.constant 0 : index
    %6 = vector.load %arg4[%c0_5, %c0_6] : memref<16x32xf32, #tpu.memory_space<vmem>>, vector<16x32xf32>
    tpu.vector_store %arg4[%c0_5, %c0_6], %5 {strides = array<i32>} : memref<16x32xf32, #tpu.memory_space<vmem>>, vector<16x32xf32>,
    return
  }
  func.func @transform_0(%arg0: i32) -> (i32, i32) {
    %c0_i32 = arith.constant 0 : i32
    %c0_i32_0 = arith.constant 0 : i32
    return %arg0, %c0_i32 : i32, i32
  }
  func.func @transform_1(%arg0: i32) -> (i32, i32) {
    %c0_i32 = arith.constant 0 : i32
    %c0_i32_0 = arith.constant 0 : i32
    %c0_i32_1 = arith.constant 0 : i32
    return %c0_i32, %c0_i32_0 : i32, i32
  }
  func.func @transform_2(%arg0: i32) -> (i32, i32) {
    %c0_i32 = arith.constant 0 : i32
    %c0_i32_0 = arith.constant 0 : i32
    %c0_i32_1 = arith.constant 0 : i32
    return %c0_i32, %c0_i32_0 : i32, i32
  }
  func.func @transform_3(%arg0: i32) -> (i32, i32) {
    %c0_i32 = arith.constant 0 : i32
    %c0_i32_0 = arith.constant 0 : i32
    return %arg0, %c0_i32 : i32, i32
  }
}

</mosaic_0001>

<bundles_post_ra>
// kernel: tpu_custom_call.1
= control target key start
LH: loop header
LB: loop body
LE: loop exit
PB: predicated region body
PF: predicated region fallthrough
CT: control target
= control target key end

     0   :  { %8 = vsyncpa [#allocation3], 0  ;;  %s249_s0 = inlined_call_operand.hbm [shape: f32[16,32], index: 0, kind: input, shape index: {}]   ;;  %s250_s1 = inlined_call_operand.hbm [shape: f32[32,32], index: 1, kind: input, shape index: {}]   ;;  %s251_s2 = inlined_call_operand.vmem [shape: f32[1,32], index: 2, kind: input, shape index: {}]   ;;  %s252_s3 = inlined_call_operand.hbm [shape: f32[16,32], index: 3, kind: output, shape index: {}]  }
   0x1   :  { %9 = vsyncpa [#allocation6], 0 }
   0x2   :  { %10 = vsyncpa [#allocation4], 0  ;;  %s15_s14 = sshll.u32 %s249_s0, 4  ;;  %s199_s15 = smov [#allocation2]   ;;  %s16_s14 = int_to_ptr.hbm [resolvable:$true] %s15_s14 }
   0x3   :  { %s17_s16 = sshll.u32 %s199_s15, 4  ;;  %s28_s19 = sshll.u32 %s250_s1, 4  ;;  %s18_s16 = int_to_ptr.vmem [resolvable:$true] %s17_s16  ;;  %s29_s19 = int_to_ptr.hbm [resolvable:$true] %s28_s19 }
   0x4   :  { %s200_s20 = smov 128   ;;  %s201_s21 = smov 8  }
   0x5   :  { %23 = dma.hbm_to_vmem [thread:$0]  %s16_s14, 256, %s18_s16, [#allocation3], %s200_s20, %s200_s20, %s201_s21  }
   0x6   :  { %s202_s22 = smov [#allocation5]  }
   0x7   :  { %s30_s23 = sshll.u32 %s202_s22, 4  ;;  %s31_s23 = int_to_ptr.vmem [resolvable:$true] %s30_s23 }
   0x8   :  { %36 = dma.hbm_to_vmem [thread:$0]  %s29_s19, 512, %s31_s23, [#allocation6], %s200_s20, %s200_s20, %s201_s21  }
   0x9   :  { %193 = dma.done.wait [#allocation3], 256  }
   0xa   :  { %194 = vsyncadd [#allocation3], 4294967040 }
   0xb   :  { %195 = dma.done.wait [#allocation6], 512  }
   0xc   :  { %196 = vsyncadd [#allocation6], 4294966784  ;;  %v52_v0 = vld [vmem:[#allocation5 + $0x18] sm:$0xff]  ;;  %v51_v1 = vld [vmem:[#allocation5 + $0x10] sm:$0xff]  ;;  %vm57_vm0 = vcmask 261120   ;;  %s203_s24 = smov [#allocation7]  }
   0xd   :  { %76 = vmatpush.msra.mxu0 %v52_v0  ;;  %111 = vmatpush.msra.mxu1 %v52_v0  ;;  %v50_v2 = vld [vmem:[#allocation5 + $0x8] sm:$0xff]  ;;  %v49_v3 = vld [vmem:[#allocation5] sm:$0xff]  ;;  %v47_v4 = vld [vmem:[#allocation2] sm:$0xff]  ;;  %s93_s25 = sshll.u32 %s203_s24, 4  ;;  %s95_s28 = sshll.u32 %s252_s3, 4  ;;  %s94_s25 = int_to_ptr.vmem [resolvable:$true] %s93_s25  ;;  %s96_s28 = int_to_ptr.hbm [resolvable:$true] %s95_s28 }
   0xe   :  { %v48_v5 = vld [vmem:[#allocation2 + $0x8] sm:$0xff]  ;;  %v120_v6 = vld [vmem:[%s251_s2] ss:$0 sm:$0xff] }
   0xf   :  { %77 = vmatpush.msra.mxu0 %v51_v1  ;;  %112 = vmatpush.msra.mxu1 %v51_v1 }
  0x11   :  { %78 = vmatpush.msra.mxu0 %v50_v2  ;;  %113 = vmatpush.msra.mxu1 %v50_v2 }
  0x13   :  { %79 = vmatpush.msra.mxu0 %v49_v3  ;;  %114 = vmatpush.msra.mxu1 %v49_v3 }
  0x14   :  { %109 = vmatmul.msk.f32.vlgmr.msra.gmra.mxu0 %vm57_vm0, %v47_v4  ;;  %110 = vmatmul.msk.f32.vlgmr.msra.gmra.mxu1 %vm57_vm0, %v48_v5 }
  0x91   :  { %v81_v7 = vpop.f32.mrf.mxu0  ;;  %v84_v8 = vpop.f32.mrf.mxu1 }
  0x92   :  { %v82_v9 = vadd.f32 %v120_v6, %v81_v7  ;;  %v85_v10 = vadd.f32 %v120_v6, %v84_v8 }
  0x94   :  { %87 = vst.msk [vmem:[#allocation7] sm:$0xff] %vm57_vm0, %v82_v9 }
  0x95   :  { %88 = vst.msk [vmem:[#allocation7 + $0x8] sm:$0xff] %vm57_vm0, %v85_v10 }
  0x96   :  { %101 = dma.vmem_to_hbm [thread:$0]  %s94_s25, 256, %s96_s28, [#allocation4], %s200_s20, %s200_s20, %s201_s21  }
  0x97   :  { %197 = dma.done.wait [#allocation4], 256  }
  0x98   :  { %198 = vsyncadd [#allocation4], 4294967040 }
  0x99   :  { %106 = vsyncpa [#allocation3], 1 }
  0x9a   :  { %107 = vsyncpa [#allocation6], 1 }
  0x9b   :  { %108 = vsyncpa [#allocation4], 1 }

</bundles_post_ra>
